<compile_context>
chip_gen: v6e
topology: v6e:2x2x1
jax: 0.10.0
libtpu: 0.0.40
codegen_flags: <defaults>
</compile_context>

<pallas_src>
import jax
import jax.numpy as jnp
from jax.experimental import pallas as pl
from jax.experimental.pallas import tpu as pltpu


def _critic_kernel(qr_ref, sel_ref, w1_ref, aux_ref, b2_ref, out_ref):
    # qr_ref, sel_ref : (tb, H)   streamed batch tiles (f32 or bf16)
    # w1_ref          : (2H, H)   first-layer weight, (in, out) layout, resident
    # aux_ref         : (2, H)    row 0 = b1, row 1 = fc2 weight (both f32)
    # b2_ref          : (1, 1)    f32 scalar in SMEM
    # out_ref         : (1, tb)   lane-dense values for this batch tile
    hidden = w1_ref.shape[1]
    qr = qr_ref[...]
    sel = sel_ref[...]

    # fc1: implicit concat via split-K, f32 accumulation on the MXU, then ReLU.
    h = (
        jnp.dot(qr, w1_ref[:hidden, :], preferred_element_type=jnp.float32)
        + jnp.dot(sel, w1_ref[hidden:, :], preferred_element_type=jnp.float32)
        + aux_ref[0:1, :]
    )
    h = jnp.maximum(h, 0.0)

    # fc2 (single output feature): VPU multiply + XLU lane reduce instead of an
    # N=1 MXU matmul; result written lane-dense as a (1, tb) row.
    v = jnp.sum(h * aux_ref[1:2, :], axis=-1) + b2_ref[0, 0]      # (tb,)
    out_ref[...] = v[None, :].astype(out_ref.dtype)


def _choose_tile_b(batch, max_tile=1024):
    """Pick a batch tile: big enough to hide per-step overhead, lane-dense
    (multiple of 128) when the batch is large, and >=2 grid steps when possible
    so the two v7x TensorCores can split the parallel batch axis."""
    if batch <= 256:
        return batch                       # single tile; tiny problem
    if batch <= max_tile:
        half = pl.cdiv(batch, 2)
        return max(128, (half // 128) * 128)
    return max_tile


def critic_forward(qr_vec, sel_vec, params, *, tile_b=None, compute_dtype=jnp.float32):
    """Runs the fused critic MLP. Returns shape (B,), f32."""
    w1, b1, w2, b2 = params["w1"], params["b1"], params["w2"], params["b2"]
    B, H = qr_vec.shape
    assert sel_vec.shape == (B, H)
    assert w1.shape == (2 * H, H) and b1.shape == (H,)
    assert w2.shape == (H, 1) and b2.shape == (1,)

    in_dtype = jnp.dtype(compute_dtype)
    qr = qr_vec.astype(in_dtype)
    sel = sel_vec.astype(in_dtype)
    w1_c = w1.astype(in_dtype)
    # Pack b1 (fc1 bias) and the fc2 weight row into one (2, H) f32 tile.
    aux = jnp.stack(
        [b1.astype(jnp.float32), w2.reshape(H).astype(jnp.float32)], axis=0
    )                                                       # (2, H)
    b2_2d = b2.reshape(1, 1).astype(jnp.float32)

    tb = tile_b if tile_b is not None else _choose_tile_b(B)
    tb = min(tb, B)
    grid = (pl.cdiv(B, tb),)

    # Explicit VMEM budget (every streamed BlockSpec is double-buffered).
    # TODO(synk): for very large hidden sizes the (2H, H) weight no longer fits
    # VMEM (esp. v7x's 64 MiB); add an output-feature grid axis or stream W1 in bf16.
    in_bytes = in_dtype.itemsize
    resident = 2 * (
        2 * tb * H * in_bytes        # qr + sel tiles
        + 2 * H * H * in_bytes       # W1 (both halves)
        + 2 * H * 4                  # aux row pair (f32)
        + tb * 4                     # output row tile
    )
    vmem_limit = int(min(max(2 * resident, 4 * 1024 * 1024), 64 * 1024 * 1024))

    out = pl.pallas_call(
        _critic_kernel,
        out_shape=jax.ShapeDtypeStruct((1, B), jnp.float32),
        grid_spec=pltpu.PrefetchScalarGridSpec(
            num_scalar_prefetch=0,
            grid=grid,
            in_specs=[
                pl.BlockSpec((tb, H), lambda i: (i, 0)),            # qr
                pl.BlockSpec((tb, H), lambda i: (i, 0)),            # sel
                pl.BlockSpec((2 * H, H), lambda i: (0, 0)),         # W1 (resident)
                pl.BlockSpec((2, H), lambda i: (0, 0)),             # b1 + w2 rows
                pl.BlockSpec(memory_space=pltpu.MemorySpace.SMEM),  # b2 scalar
            ],
            out_specs=pl.BlockSpec((1, tb), lambda i: (0, i)),      # lane-dense
        ),
        compiler_params=pltpu.CompilerParams(
            dimension_semantics=("parallel",),
            vmem_limit_bytes=vmem_limit,
        ),
    )(qr, sel, w1_c, aux, b2_2d)

    return out.reshape(B)   # squeeze(-1)


def init_params(key, hidden_size):
    """Deterministic init mirroring nn.Linear shapes (weights stored as (in, out))."""
    k1, k2, k3, k4 = jax.random.split(key, 4)
    fan_in1 = 2 * hidden_size
    fan_in2 = hidden_size
    lim1 = 1.0 / jnp.sqrt(fan_in1)
    lim2 = 1.0 / jnp.sqrt(fan_in2)
    return {
        "w1": jax.random.uniform(k1, (2 * hidden_size, hidden_size), jnp.float32, -lim1, lim1),
        "b1": jax.random.uniform(k2, (hidden_size,), jnp.float32, -lim1, lim1),
        "w2": jax.random.uniform(k3, (hidden_size, 1), jnp.float32, -lim2, lim2),
        "b2": jax.random.uniform(k4, (1,), jnp.float32, -lim2, lim2),
    }


def critic_reference(qr_vec, sel_vec, params):
    x = jnp.concatenate([qr_vec, sel_vec], axis=-1)
    h = jnp.maximum(x @ params["w1"] + params["b1"], 0.0)
    return (h @ params["w2"] + params["b2"])[:, 0]


if __name__ == "__main__":
    hidden_size = 32
    batch = 8

    key = jax.random.PRNGKey(0)
    kp, kq, ks = jax.random.split(key, 3)
    params = init_params(kp, hidden_size)
    qr_vec = jax.random.normal(kq, (batch, hidden_size), jnp.float32)
    sel_vec = jax.random.normal(ks, (batch, hidden_size), jnp.float32)

    ref = critic_reference(qr_vec, sel_vec, params)

    # f32 path: exact match with the reference.
    out = jax.block_until_ready(critic_forward(qr_vec, sel_vec, params))
    assert out.shape == (batch,)
    assert jnp.allclose(out, ref, atol=1e-5, rtol=1e-5), (out, ref)

    # bf16 streaming path (f32 accumulation / biases): looser tolerance.
    out_bf16 = jax.block_until_ready(
        critic_forward(qr_vec, sel_vec, params, compute_dtype=jnp.bfloat16)
    )
    assert out_bf16.shape == (batch,)
    assert jnp.allclose(out_bf16, ref, atol=5e-2, rtol=5e-2), (out_bf16, ref)

    print("KERNEL_OK")
</pallas_src>

<mosaic_0001>
module attributes {stable_mosaic.version = 11 : i64} {
  func.func @_critic_kernel(%arg0: i32, %arg1: memref<8x32xf32, #tpu.memory_space<vmem>>, %arg2: memref<8x32xf32, #tpu.memory_space<vmem>>, %arg3: memref<64x32xf32, #tpu.memory_space<vmem>>, %arg4: memref<2x32xf32, #tpu.memory_space<vmem>>, %arg5: memref<1x1xf32, #tpu.memory_space<smem>>, %arg6: memref<1x8xf32, #tpu.memory_space<vmem>>) attributes {dimension_semantics = [#tpu.dimension_semantics<parallel>], iteration_bounds = array<i64: 1>, scalar_prefetch = 0 : i64, scratch_operands = 0 : i64, tpu.core_type = #tpu.core_type<tc>, window_params = [{transform_indices = @transform_0, window_bounds = array<i64: 8, 32>}, {transform_indices = @transform_1, window_bounds = array<i64: 8, 32>}, {pipeline_mode = #tpu.pipeline_mode<synchronous>, transform_indices = @transform_2, window_bounds = array<i64: 64, 32>}, {pipeline_mode = #tpu.pipeline_mode<synchronous>, transform_indices = @transform_3, window_bounds = array<i64: 2, 32>}, {transform_indices = @transform_4, window_bounds = array<i64: 1, 1>}, {transform_indices = @transform_5, window_bounds = array<i64: 1, 8>}]} {
    %c0 = arith.constant 0 : index
    %c0_0 = arith.constant 0 : index
    %0 = vector.load %arg1[%c0, %c0_0] : memref<8x32xf32, #tpu.memory_space<vmem>>, vector<8x32xf32>
    %c0_1 = arith.constant 0 : index
    %c0_2 = arith.constant 0 : index
    %1 = vector.load %arg2[%c0_1, %c0_2] : memref<8x32xf32, #tpu.memory_space<vmem>>, vector<8x32xf32>
    %c0_3 = arith.constant 0 : index
    %c0_4 = arith.constant 0 : index
    %2 = vector.load %arg3[%c0_3, %c0_4] : memref<64x32xf32, #tpu.memory_space<vmem>>, vector<32x32xf32>
    %cst = arith.constant dense<0.000000e+00> : vector<8x32xf32>
    %3 = tpu.matmul %0, %2, %cst {dimension_numbers = #tpu.dot_dimension_numbers<[1], [0], [0], [1], [0, 0, 1, 1], [], []>} : vector<8x32xf32>, vector<32x32xf32>, vector<8x32xf32> -> vector<8x32xf32>
    %c32 = arith.constant 32 : index
    %c0_5 = arith.constant 0 : index
    %4 = vector.load %arg3[%c32, %c0_5] : memref<64x32xf32, #tpu.memory_space<vmem>>, vector<32x32xf32>
    %cst_6 = arith.constant dense<0.000000e+00> : vector<8x32xf32>
    %5 = tpu.matmul %1, %4, %cst_6 {dimension_numbers = #tpu.dot_dimension_numbers<[1], [0], [0], [1], [0, 0, 1, 1], [], []>} : vector<8x32xf32>, vector<32x32xf32>, vector<8x32xf32> -> vector<8x32xf32>
    %6 = arith.addf %3, %5 : vector<8x32xf32>
    %c0_7 = arith.constant 0 : index
    %c0_8 = arith.constant 0 : index
    %7 = vector.load %arg4[%c0_7, %c0_8] : memref<2x32xf32, #tpu.memory_space<vmem>>, vector<1x32xf32>
    %8 = vector.broadcast %7 : vector<1x32xf32> to vector<8x32xf32>
    %9 = arith.addf %6, %8 : vector<8x32xf32>
    %cst_9 = arith.constant 0.000000e+00 : f32
    %10 = vector.broadcast %cst_9 : f32 to vector<8x32xf32>
    %11 = arith.maximumf %9, %10 : vector<8x32xf32>
    %c1 = arith.constant 1 : index
    %c0_10 = arith.constant 0 : index
    %12 = vector.load %arg4[%c1, %c0_10] : memref<2x32xf32, #tpu.memory_space<vmem>>, vector<1x32xf32>
    %13 = vector.broadcast %12 : vector<1x32xf32> to vector<8x32xf32>
    %14 = arith.mulf %11, %13 : vector<8x32xf32>
    %cst_11 = arith.constant dense<0.000000e+00> : vector<8xf32>
    %15 = vector.multi_reduction <add>, %14, %cst_11 [1] : vector<8x32xf32> to vector<8xf32>
    %c0_12 = arith.constant 0 : index
    %c0_13 = arith.constant 0 : index
    %16 = memref.load %arg5[%c0_12, %c0_13] : memref<1x1xf32, #tpu.memory_space<smem>>
    %17 = vector.broadcast %16 : f32 to vector<8xf32>
    %18 = arith.addf %15, %17 : vector<8xf32>
    %19 = vector.shape_cast %18 : vector<8xf32> to vector<1x8xf32>
    %c0_14 = arith.constant 0 : index
    %c0_15 = arith.constant 0 : index
    %20 = vector.load %arg6[%c0_14, %c0_15] : memref<1x8xf32, #tpu.memory_space<vmem>>, vector<1x8xf32>
    tpu.vector_store %arg6[%c0_14, %c0_15], %19 {strides = array<i32>} : memref<1x8xf32, #tpu.memory_space<vmem>>, vector<1x8xf32>,
    return
  }
  func.func @transform_0(%arg0: i32) -> (i32, i32) {
    %c0_i32 = arith.constant 0 : i32
    %c0_i32_0 = arith.constant 0 : i32
    return %arg0, %c0_i32 : i32, i32
  }
  func.func @transform_1(%arg0: i32) -> (i32, i32) {
    %c0_i32 = arith.constant 0 : i32
    %c0_i32_0 = arith.constant 0 : i32
    return %arg0, %c0_i32 : i32, i32
  }
  func.func @transform_2(%arg0: i32) -> (i32, i32) {
    %c0_i32 = arith.constant 0 : i32
    %c0_i32_0 = arith.constant 0 : i32
    %c0_i32_1 = arith.constant 0 : i32
    return %c0_i32, %c0_i32_0 : i32, i32
  }
  func.func @transform_3(%arg0: i32) -> (i32, i32) {
    %c0_i32 = arith.constant 0 : i32
    %c0_i32_0 = arith.constant 0 : i32
    %c0_i32_1 = arith.constant 0 : i32
    return %c0_i32, %c0_i32_0 : i32, i32
  }
  func.func @transform_4(%arg0: i32) -> (i32, i32) {
    %c0_i32 = arith.constant 0 : i32
    %c0_i32_0 = arith.constant 0 : i32
    %c0_i32_1 = arith.constant 0 : i32
    return %c0_i32, %c0_i32_0 : i32, i32
  }
  func.func @transform_5(%arg0: i32) -> (i32, i32) {
    %c0_i32 = arith.constant 0 : i32
    %c0_i32_0 = arith.constant 0 : i32
    return %c0_i32, %arg0 : i32, i32
  }
}

</mosaic_0001>

<bundles_post_ra>
// kernel: tpu_custom_call.1
= control target key start
LH: loop header
LB: loop body
LE: loop exit
PB: predicated region body
PF: predicated region fallthrough
CT: control target
= control target key end

     0   :  { %v283_v2 = vmov 0.0   ;;  %s361_s0 = inlined_call_operand.vmem [shape: f32[8,32], index: 0, kind: input, shape index: {}]   ;;  %s362_s1 = inlined_call_operand.vmem [shape: f32[8,32], index: 1, kind: input, shape index: {}]   ;;  %s363_s2 = inlined_call_operand.vmem [shape: f32[64,32], index: 2, kind: input, shape index: {}]   ;;  %s364_s3 = inlined_call_operand.vmem [shape: f32[2,32], index: 3, kind: input, shape index: {}]   ;;  %s365_s4 = inlined_call_operand.<no memory space> [shape: f32[1,1], index: 4, kind: input, shape index: {}]   ;;  %s366_s5 = inlined_call_operand.hbm [shape: f32[1,8], index: 5, kind: output, shape index: {}]  }
   0x1   :  { %v31_v0 = vld [vmem:[%s363_s2 + $0x38] sm:$0xff]  ;;  %236 = vmatprep.subr.mxu0 %v283_v2  ;;  %247 = vmatprep.subr.mxu1 %v283_v2  ;;  %v30_v3 = vld [vmem:[%s363_s2 + $0x30] sm:$0xff]  ;;  %v29_v5 = vld [vmem:[%s363_s2 + $0x28] sm:$0xff] }
   0x2   :  { %v27_v1 = vld [vmem:[%s363_s2 + $0x18] sm:$0xff]  ;;  %v26_v4 = vld [vmem:[%s363_s2 + $0x10] sm:$0xff]  ;;  %237 = vmatpush3.msra.mxu0 %v31_v0  ;;  %v25_v6 = vld [vmem:[%s363_s2 + $0x8] sm:$0xff] }
   0x3   :  { %248 = vmatpush3.msra.mxu1 %v27_v1  ;;  %238 = vmatprep.subr.mxu0 %v283_v2 }
   0x4   :  { %249 = vmatprep.subr.mxu1 %v283_v2 }
   0x5   :  { %11 = vsyncpa [#allocation4], 0  ;;  %239 = vmatpush3.msra.mxu0 %v30_v3  ;;  %250 = vmatpush3.msra.mxu1 %v26_v4  ;;  %v28_v7 = vld [vmem:[%s363_s2 + $0x20] sm:$0xff]  ;;  %vm32_vm0 = vcmask 261120   ;;  %vm284_vm1 = vmmov 0   ;;  %v199_v22 = vlaneseq  ;;  %v196_v25 = vstv %s365_s4  ;;  %s285_s16 = smov [#allocation3]  }
   0x6   :  { %240 = vmatprep.subr.mxu0 %v283_v2  ;;  %251 = vmatprep.subr.mxu1 %v283_v2  ;;  %v24_v8 = vld [vmem:[%s363_s2] sm:$0xff]  ;;  %s214_s17 = sshll.u32 %s285_s16, 4  ;;  %vm206_vm2 = vcmask 57344   ;;  %s215_s17 = int_to_ptr.vmem [resolvable:$true] %s214_s17 }
   0x7   :  { %241 = vmatpush3.msra.mxu0 %v29_v5  ;;  %252 = vmatpush3.msra.mxu1 %v25_v6  ;;  %v23_v9 = vld [vmem:[%s362_s1] sm:$0xff]  ;;  %v200_v23 = vand.u32 127, %v199_v22  ;;  %v202_v24 = vshrl.u32 %v199_v22, 7  ;;  %s265_s18 = scalar_lea.vmem %s215_s17, 32  ;;  %p266_p1 = scmp.lt.s32.totalorder %s215_s17, %s215_s17 }
   0x8   :  { %242 = vmatprep.subr.mxu0 %v283_v2  ;;  %253 = vmatprep.subr.mxu1 %v283_v2  ;;  %v22_v10 = vld [vmem:[%s361_s0] sm:$0xff] }
   0x9   :  { %243 = vmatpush3.msra.mxu0 %v28_v7  ;;  %244 = vmatprep.mubr.msk.f32.mxu0 %vm284_vm1, %v283_v2  ;;  %v224_v13 = vld [vmem:[%s364_s3] ss:$0 sm:$0xff]  ;;  %v225_v18 = vld [vmem:[%s364_s3 + $0x1] ss:$0 sm:$0xff]  ;;  %v203_v26 = vsub.s32 %v200_v23, %v202_v24  ;;  %s261_s3 = scalar_lea.vmem %s215_s17, 16 }
   0xa   :  { %254 = vmatpush3.msra.mxu1 %v24_v8  ;;  %255 = vmatprep.mubr.msk.f32.mxu1 %vm284_vm1, %v283_v2  ;;  %p262_p0 = scmp.ne.s32.totalorder %s215_s17, %s261_s3  ;;  %p267_p2 = scmp.lt.s32.totalorder %s265_s18, %s261_s3 }
   0xb   :  { %245 = vmatmul.mubr.msk.f32.vlgmr.msra.gmra.mxu0 %vm32_vm0, %v23_v9  ;;  %256 = vmatmul.mubr.msk.f32.vlgmr.msra.gmra.mxu1 %vm32_vm0, %v22_v10 }
   0xc   :  { %p268_p3 = por %p267_p2, %p266_p1 }
   0xe   :  { %p269_p4 = pnand %p268_p3, %p262_p0 }
  0xcb   :  { %v102_v11 = vpop.f32.mrf.mxu0  ;;  %v175_v12 = vpop.f32.mrf.mxu1 }
  0xcc   :  { %v176_v14 = vadd.f32 %v175_v12, %v102_v11 }
  0xcd   :  { %v246_v15 = vpop.f32.mrf.mxu0  ;;  %v257_v16 = vpop.f32.mrf.mxu1 }
  0xce   :  { %v184_v17 = vadd.f32 %v224_v13, %v176_v14 }
  0xd0   :  { %v185_v19 = vmax.f32 %v184_v17, 0.0 }
  0xd2   :  { %v191_v20 = vmul.f32 %v225_v18, %v185_v19 }
  0xd4   :  { %v192_v21 = vsel %vm32_vm0, %v191_v20, 0.0 }
  0xd5   :  { %193 = vadd.xlane.f32.xlu0 %v192_v21 }
 0x15e   :  { %v194_v27 = vpop.xlane.xlu0 %193 }
 0x15f   :  { %v197_v28 = vadd.f32 %v196_v25, %v194_v27 }
 0x161   :  { %v204_v29 = vrot.slane %v197_v28, %v203_v26 }
 0x163   :  { %207 = vst.msk [vmem:[#allocation3] sm:$0x1] %vm206_vm2, %v204_v29 }
 0x164   :  { %272 = shalt.err (!%p269_p4)
}
 0x165   :  { %217 = dma.vmem_to_hbm [thread:$0]  %s215_s17, 16, %s366_s5, [#allocation4]  }
 0x166   :  { %281 = dma.done.wait [#allocation4], 16  }
 0x167   :  { %282 = vsyncadd [#allocation4], 4294967280 }
 0x168   :  { %221 = vsyncpa [#allocation4], 1 }

</bundles_post_ra>
